<compile_context>
chip_gen: v6e
topology: v6e:2x2x1
jax: 0.10.0
libtpu: 0.0.40
codegen_flags: <defaults>
</compile_context>

<pallas_src>
import numpy as np

import jax
import jax.numpy as jnp
from jax.experimental import pallas as pl
from jax.experimental.pallas import tpu as pltpu

SUBLANE = 8


def _round_up(x, m):
    return (x + m - 1) // m * m


def _softplus(x):
    # PyTorch nn.Softplus(beta=1, threshold=20): identity above threshold,
    # log1p(exp(x)) below.  Note the select evaluates both branches: for
    # x >> 88 in f32, exp(x) = inf and log1p(inf) = inf, which the select
    # discards, so the result is still correct (but inf-checking tools will
    # see the transient inf).  exp/log1p go to the EUP slot.
    return jnp.where(x > 20.0, x, jnp.log1p(jnp.exp(x)))


def _make_kernel(input_dims):
    """Build a kernel specialized to the static per-input widths of W1."""
    offs = np.concatenate([[0], np.cumsum(input_dims)]).astype(np.int64).tolist()
    n_in = len(input_dims)

    def kernel(*refs):
        x_refs = refs[:n_in]
        w1_ref, b1_ref, w2_ref, b2_ref, wh_ref, bh_ref, out_ref = refs[n_in:]

        # Layer 1: split W1 by rows (static slices) and accumulate the partial
        # products -- avoids materializing concat(inputs) in HBM.  (If the
        # caller already has one pre-concatenated [B, sum(d_i)] array, pass it
        # as a single input and this collapses to one dot.)
        w1 = w1_ref[...]
        acc = jnp.dot(x_refs[0][...], w1[offs[0]:offs[1], :],
                      preferred_element_type=jnp.float32)
        for i in range(1, n_in):
            acc = acc + jnp.dot(x_refs[i][...], w1[offs[i]:offs[i + 1], :],
                                preferred_element_type=jnp.float32)
        h1 = _softplus(acc + b1_ref[...])

        # Layer 2.
        h2 = _softplus(
            jnp.dot(h1, w2_ref[...], preferred_element_type=jnp.float32)
            + b2_ref[...])

        # Fused (mu | logvar) head: exactly 2*out_dim lanes, no zero padding.
        # The logvar "-2.0" offset is already folded into bh.
        out_ref[...] = (
            jnp.dot(h2, wh_ref[...], preferred_element_type=jnp.float32)
            + bh_ref[...])

    return kernel


def pack_params(params, out_dim):
    """Fuse (Wmu|Wlv) / (bmu | blv-2) into one 2*out_dim-wide head; do once."""
    del out_dim  # widths come from the weights themselves
    w1, b1, w2, b2, wmu, bmu, wlv, blv = params

    wh = jnp.concatenate(
        [wmu.astype(jnp.float32), wlv.astype(jnp.float32)], axis=1)
    bh = jnp.concatenate(
        [bmu.reshape(1, -1).astype(jnp.float32),
         blv.reshape(1, -1).astype(jnp.float32) - 2.0], axis=1)

    return (w1.astype(jnp.float32), b1.reshape(1, -1).astype(jnp.float32),
            w2.astype(jnp.float32), b2.reshape(1, -1).astype(jnp.float32),
            wh, bh)


def diag_gaussian_forward(inputs, packed_params, *, block_batch=4096):
    """inputs: list of [B, d_i] arrays.

    Returns the fused [B, 2*out_dim] slab laid out as (mu | logvar).  Split it
    downstream (see split_mu_logvar) instead of inside this call path, so no
    extra HBM passes are added around the kernel.
    """
    w1, b1, w2, b2, wh, bh = packed_params
    input_dims = tuple(int(x.shape[1]) for x in inputs)
    B = int(inputs[0].shape[0])
    out_w = int(wh.shape[1])  # 2 * out_dim

    # Batch tile: multiple of 8 sublanes, large (amortizes the ~0.35 us/step
    # grid overhead) but capped at ceil(B/2) so there are >= 2 grid steps
    # whenever B allows -> both v7x TensorCores are used.  No wrapper-side
    # padding: the ragged last block is handled by Pallas (masked writeback;
    # garbage tail rows never cross rows since all ops are row-independent).
    tm = min(block_batch, _round_up(pl.cdiv(B, 2), SUBLANE))
    grid = (pl.cdiv(B, tm),)

    x_specs = [pl.BlockSpec((tm, d), lambda i: (i, 0)) for d in input_dims]
    const_spec = lambda a: pl.BlockSpec(a.shape, lambda i: (0,) * a.ndim)
    w_specs = [const_spec(a) for a in (w1, b1, w2, b2, wh, bh)]
    out_spec = pl.BlockSpec((tm, out_w), lambda i: (i, 0))

    # VMEM budget: double-buffered x/out tiles + single-buffered resident
    # weights (constant index map -> no second pipeline buffer) + slack.
    dsize = max(int(x.dtype.itemsize) for x in inputs)
    tile_bytes = tm * (dsize * sum(input_dims) + 4 * out_w)
    weight_bytes = sum(int(np.prod(a.shape)) * int(a.dtype.itemsize)
                       for a in (w1, b1, w2, b2, wh, bh))
    vmem_bytes = max(2 * tile_bytes + weight_bytes + (4 << 20), 8 << 20)

    d_in, h1, h2 = sum(input_dims), int(w1.shape[1]), int(w2.shape[1])
    cost = pl.CostEstimate(
        flops=2 * B * (d_in * h1 + h1 * h2 + h2 * out_w),
        transcendentals=2 * B * (h1 + h2),
        bytes_accessed=int(dsize * B * d_in + 4 * B * out_w + weight_bytes),
    )

    return pl.pallas_call(
        _make_kernel(input_dims),
        out_shape=jax.ShapeDtypeStruct((B, out_w), jnp.float32),
        grid=grid,
        in_specs=x_specs + w_specs,
        out_specs=out_spec,
        compiler_params=pltpu.CompilerParams(
            dimension_semantics=("parallel",),
            vmem_limit_bytes=int(vmem_bytes)),
        cost_estimate=cost,
    )(*inputs, w1, b1, w2, b2, wh, bh)


def split_mu_logvar(slab, out_dim):
    """Split the fused (mu | logvar) slab; do this in the downstream consumer."""
    return slab[:, :out_dim], slab[:, out_dim:2 * out_dim]


def init_linear(key, fan_in, fan_out):
    """Deterministic init mimicking torch.nn.Linear (uniform +-1/sqrt(fan_in)).

    Weight is returned as [fan_in, fan_out] (transposed vs. PyTorch storage),
    bias as [1, fan_out].
    """
    kw, kb = jax.random.split(key)
    bound = 1.0 / jnp.sqrt(jnp.float32(fan_in))
    w = jax.random.uniform(kw, (fan_in, fan_out), jnp.float32, -bound, bound)
    b = jax.random.uniform(kb, (1, fan_out), jnp.float32, -bound, bound)
    return w, b


def reference_forward(inputs, params):
    (w1, b1, w2, b2, wmu, bmu, wlv, blv) = params
    x = jnp.concatenate(inputs, axis=1)
    h = jax.nn.softplus(x @ w1 + b1)
    h = jax.nn.softplus(h @ w2 + b2)
    return h @ wmu + bmu, h @ wlv + blv - 2.0


if __name__ == "__main__":
    # DiagGaussianModule(input_dims=[16, 24], hidden_dims=[32, 32], output_dim=16)
    input_dims = [16, 24]
    hidden_dims = [32, 32]
    output_dim = 16
    batch = 8

    key = jax.random.PRNGKey(0)
    k_in0, k_in1, k_l1, k_l2, k_mu, k_lv = jax.random.split(key, 6)

    inputs = [
        jax.random.normal(k_in0, (batch, input_dims[0]), jnp.float32),
        jax.random.normal(k_in1, (batch, input_dims[1]), jnp.float32),
    ]

    d_in = sum(input_dims)
    w1, b1 = init_linear(k_l1, d_in, hidden_dims[0])
    w2, b2 = init_linear(k_l2, hidden_dims[0], hidden_dims[1])
    wmu, bmu = init_linear(k_mu, hidden_dims[1], output_dim)
    wlv, blv = init_linear(k_lv, hidden_dims[1], output_dim)
    raw_params = (w1, b1, w2, b2, wmu, bmu, wlv, blv)

    # Head fusion is done once, outside the kernel call path.
    packed = pack_params(raw_params, output_dim)

    slab = diag_gaussian_forward(inputs, packed)
    slab = jax.block_until_ready(slab)
    mu, logvar = split_mu_logvar(slab, output_dim)   # downstream split

    mu_ref, lv_ref = reference_forward(inputs, raw_params)
    assert mu.shape == (batch, output_dim) and logvar.shape == (batch, output_dim)
    assert jnp.allclose(mu, mu_ref, atol=1e-5, rtol=1e-5)
    assert jnp.allclose(logvar, lv_ref, atol=1e-5, rtol=1e-5)

    # TODO(synk): sample()/KL/logp mixin methods and training-time dropout /
    # batch-norm / weight-norm paths are outside the eval forward pass and not
    # implemented here.
    print("KERNEL_OK")
</pallas_src>

<mosaic_0001>
module attributes {stable_mosaic.version = 11 : i64} {
  func.func @kernel(%arg0: i32, %arg1: memref<8x16xf32, #tpu.memory_space<vmem>>, %arg2: memref<8x24xf32, #tpu.memory_space<vmem>>, %arg3: memref<40x32xf32, #tpu.memory_space<vmem>>, %arg4: memref<1x32xf32, #tpu.memory_space<vmem>>, %arg5: memref<32x32xf32, #tpu.memory_space<vmem>>, %arg6: memref<1x32xf32, #tpu.memory_space<vmem>>, %arg7: memref<32x32xf32, #tpu.memory_space<vmem>>, %arg8: memref<1x32xf32, #tpu.memory_space<vmem>>, %arg9: memref<8x32xf32, #tpu.memory_space<vmem>>) attributes {dimension_semantics = [#tpu.dimension_semantics<parallel>], iteration_bounds = array<i64: 1>, scalar_prefetch = 0 : i64, scratch_operands = 0 : i64, tpu.core_type = #tpu.core_type<tc>, window_params = [{transform_indices = @transform_0, window_bounds = array<i64: 8, 16>}, {transform_indices = @transform_1, window_bounds = array<i64: 8, 24>}, {pipeline_mode = #tpu.pipeline_mode<synchronous>, transform_indices = @transform_2, window_bounds = array<i64: 40, 32>}, {pipeline_mode = #tpu.pipeline_mode<synchronous>, transform_indices = @transform_3, window_bounds = array<i64: 1, 32>}, {pipeline_mode = #tpu.pipeline_mode<synchronous>, transform_indices = @transform_4, window_bounds = array<i64: 32, 32>}, {pipeline_mode = #tpu.pipeline_mode<synchronous>, transform_indices = @transform_5, window_bounds = array<i64: 1, 32>}, {pipeline_mode = #tpu.pipeline_mode<synchronous>, transform_indices = @transform_6, window_bounds = array<i64: 32, 32>}, {pipeline_mode = #tpu.pipeline_mode<synchronous>, transform_indices = @transform_7, window_bounds = array<i64: 1, 32>}, {transform_indices = @transform_8, window_bounds = array<i64: 8, 32>}]} {
    %c0 = arith.constant 0 : index
    %c0_0 = arith.constant 0 : index
    %0 = vector.load %arg3[%c0, %c0_0] : memref<40x32xf32, #tpu.memory_space<vmem>>, vector<40x32xf32>
    %c0_1 = arith.constant 0 : index
    %c0_2 = arith.constant 0 : index
    %1 = vector.load %arg1[%c0_1, %c0_2] : memref<8x16xf32, #tpu.memory_space<vmem>>, vector<8x16xf32>
    %2 = vector.extract_strided_slice %0 {offsets = [0, 0], sizes = [16, 32], strides = [1, 1]} : vector<40x32xf32> to vector<16x32xf32>
    %cst = arith.constant dense<0.000000e+00> : vector<8x32xf32>
    %3 = tpu.matmul %1, %2, %cst {dimension_numbers = #tpu.dot_dimension_numbers<[1], [0], [0], [1], [0, 0, 1, 1], [], []>} : vector<8x16xf32>, vector<16x32xf32>, vector<8x32xf32> -> vector<8x32xf32>
    %c0_3 = arith.constant 0 : index
    %c0_4 = arith.constant 0 : index
    %4 = vector.load %arg2[%c0_3, %c0_4] : memref<8x24xf32, #tpu.memory_space<vmem>>, vector<8x24xf32>
    %5 = vector.extract_strided_slice %0 {offsets = [16, 0], sizes = [24, 32], strides = [1, 1]} : vector<40x32xf32> to vector<24x32xf32>
    %cst_5 = arith.constant dense<0.000000e+00> : vector<8x32xf32>
    %6 = tpu.matmul %4, %5, %cst_5 {dimension_numbers = #tpu.dot_dimension_numbers<[1], [0], [0], [1], [0, 0, 1, 1], [], []>} : vector<8x24xf32>, vector<24x32xf32>, vector<8x32xf32> -> vector<8x32xf32>
    %7 = arith.addf %3, %6 : vector<8x32xf32>
    %c0_6 = arith.constant 0 : index
    %c0_7 = arith.constant 0 : index
    %8 = vector.load %arg4[%c0_6, %c0_7] : memref<1x32xf32, #tpu.memory_space<vmem>>, vector<1x32xf32>
    %9 = vector.broadcast %8 : vector<1x32xf32> to vector<8x32xf32>
    %10 = arith.addf %7, %9 : vector<8x32xf32>
    %cst_8 = arith.constant 2.000000e+01 : f32
    %11 = vector.broadcast %cst_8 : f32 to vector<8x32xf32>
    %12 = arith.cmpf ogt, %10, %11 : vector<8x32xf32>
    %13 = math.exp %10 : vector<8x32xf32>
    %14 = math.log1p %13 : vector<8x32xf32>
    %15 = arith.select %12, %10, %14 : vector<8x32xi1>, vector<8x32xf32>
    %c0_9 = arith.constant 0 : index
    %c0_10 = arith.constant 0 : index
    %16 = vector.load %arg5[%c0_9, %c0_10] : memref<32x32xf32, #tpu.memory_space<vmem>>, vector<32x32xf32>
    %cst_11 = arith.constant dense<0.000000e+00> : vector<8x32xf32>
    %17 = tpu.matmul %15, %16, %cst_11 {dimension_numbers = #tpu.dot_dimension_numbers<[1], [0], [0], [1], [0, 0, 1, 1], [], []>} : vector<8x32xf32>, vector<32x32xf32>, vector<8x32xf32> -> vector<8x32xf32>
    %c0_12 = arith.constant 0 : index
    %c0_13 = arith.constant 0 : index
    %18 = vector.load %arg6[%c0_12, %c0_13] : memref<1x32xf32, #tpu.memory_space<vmem>>, vector<1x32xf32>
    %19 = vector.broadcast %18 : vector<1x32xf32> to vector<8x32xf32>
    %20 = arith.addf %17, %19 : vector<8x32xf32>
    %cst_14 = arith.constant 2.000000e+01 : f32
    %21 = vector.broadcast %cst_14 : f32 to vector<8x32xf32>
    %22 = arith.cmpf ogt, %20, %21 : vector<8x32xf32>
    %23 = math.exp %20 : vector<8x32xf32>
    %24 = math.log1p %23 : vector<8x32xf32>
    %25 = arith.select %22, %20, %24 : vector<8x32xi1>, vector<8x32xf32>
    %c0_15 = arith.constant 0 : index
    %c0_16 = arith.constant 0 : index
    %26 = vector.load %arg7[%c0_15, %c0_16] : memref<32x32xf32, #tpu.memory_space<vmem>>, vector<32x32xf32>
    %cst_17 = arith.constant dense<0.000000e+00> : vector<8x32xf32>
    %27 = tpu.matmul %25, %26, %cst_17 {dimension_numbers = #tpu.dot_dimension_numbers<[1], [0], [0], [1], [0, 0, 1, 1], [], []>} : vector<8x32xf32>, vector<32x32xf32>, vector<8x32xf32> -> vector<8x32xf32>
    %c0_18 = arith.constant 0 : index
    %c0_19 = arith.constant 0 : index
    %28 = vector.load %arg8[%c0_18, %c0_19] : memref<1x32xf32, #tpu.memory_space<vmem>>, vector<1x32xf32>
    %29 = vector.broadcast %28 : vector<1x32xf32> to vector<8x32xf32>
    %30 = arith.addf %27, %29 : vector<8x32xf32>
    %c0_20 = arith.constant 0 : index
    %c0_21 = arith.constant 0 : index
    %31 = vector.load %arg9[%c0_20, %c0_21] : memref<8x32xf32, #tpu.memory_space<vmem>>, vector<8x32xf32>
    tpu.vector_store %arg9[%c0_20, %c0_21], %30 {strides = array<i32>} : memref<8x32xf32, #tpu.memory_space<vmem>>, vector<8x32xf32>,
    return
  }
  func.func @transform_0(%arg0: i32) -> (i32, i32) {
    %c0_i32 = arith.constant 0 : i32
    %c0_i32_0 = arith.constant 0 : i32
    return %arg0, %c0_i32 : i32, i32
  }
  func.func @transform_1(%arg0: i32) -> (i32, i32) {
    %c0_i32 = arith.constant 0 : i32
    %c0_i32_0 = arith.constant 0 : i32
    return %arg0, %c0_i32 : i32, i32
  }
  func.func @transform_2(%arg0: i32) -> (i32, i32) {
    %c0_i32 = arith.constant 0 : i32
    %c0_i32_0 = arith.constant 0 : i32
    %c0_i32_1 = arith.constant 0 : i32
    return %c0_i32, %c0_i32_0 : i32, i32
  }
  func.func @transform_3(%arg0: i32) -> (i32, i32) {
    %c0_i32 = arith.constant 0 : i32
    %c0_i32_0 = arith.constant 0 : i32
    %c0_i32_1 = arith.constant 0 : i32
    return %c0_i32, %c0_i32_0 : i32, i32
  }
  func.func @transform_4(%arg0: i32) -> (i32, i32) {
    %c0_i32 = arith.constant 0 : i32
    %c0_i32_0 = arith.constant 0 : i32
    %c0_i32_1 = arith.constant 0 : i32
    return %c0_i32, %c0_i32_0 : i32, i32
  }
  func.func @transform_5(%arg0: i32) -> (i32, i32) {
    %c0_i32 = arith.constant 0 : i32
    %c0_i32_0 = arith.constant 0 : i32
    %c0_i32_1 = arith.constant 0 : i32
    return %c0_i32, %c0_i32_0 : i32, i32
  }
  func.func @transform_6(%arg0: i32) -> (i32, i32) {
    %c0_i32 = arith.constant 0 : i32
    %c0_i32_0 = arith.constant 0 : i32
    %c0_i32_1 = arith.constant 0 : i32
    return %c0_i32, %c0_i32_0 : i32, i32
  }
  func.func @transform_7(%arg0: i32) -> (i32, i32) {
    %c0_i32 = arith.constant 0 : i32
    %c0_i32_0 = arith.constant 0 : i32
    %c0_i32_1 = arith.constant 0 : i32
    return %c0_i32, %c0_i32_0 : i32, i32
  }
  func.func @transform_8(%arg0: i32) -> (i32, i32) {
    %c0_i32 = arith.constant 0 : i32
    %c0_i32_0 = arith.constant 0 : i32
    return %arg0, %c0_i32 : i32, i32
  }
}

</mosaic_0001>

<bundles_post_ra>
// kernel: tpu_custom_call.1
= control target key start
LH: loop header
LB: loop body
LE: loop exit
PB: predicated region body
PF: predicated region fallthrough
CT: control target
= control target key end

     0   :  { %13 = vsyncpa [#allocation3], 0  ;;  %s664_s0 = inlined_call_operand.vmem [shape: f32[8,16], index: 0, kind: input, shape index: {}]   ;;  %s665_s1 = inlined_call_operand.hbm [shape: f32[8,24], index: 1, kind: input, shape index: {}]   ;;  %s666_s2 = inlined_call_operand.vmem [shape: f32[40,32], index: 2, kind: input, shape index: {}]   ;;  %s667_s3 = inlined_call_operand.vmem [shape: f32[1,32], index: 3, kind: input, shape index: {}]   ;;  %s668_s4 = inlined_call_operand.vmem [shape: f32[32,32], index: 4, kind: input, shape index: {}]   ;;  %s669_s5 = inlined_call_operand.vmem [shape: f32[1,32], index: 5, kind: input, shape index: {}]   ;;  %s670_s6 = inlined_call_operand.vmem [shape: f32[32,32], index: 6, kind: input, shape index: {}]   ;;  %s671_s7 = inlined_call_operand.vmem [shape: f32[1,32], index: 7, kind: input, shape index: {}]   ;;  %s672_s8 = inlined_call_operand.hbm [shape: f32[8,32], index: 8, kind: output, shape index: {}]  }
   0x1   :  { %14 = vsyncpa [#allocation4], 0  ;;  %s534_s27 = smov [#allocation2]  }
   0x2   :  { %s23_s28 = sshll.u32 %s534_s27, 4  ;;  %s24_s28 = int_to_ptr.vmem [resolvable:$true] %s23_s28 }
   0x3   :  { %s498_s29 = scalar_lea.vmem %s24_s28, 128  ;;  %p503_p1 = scmp.lt.s32.totalorder %s24_s28, %s24_s28 }
   0x4   :  { %p499_p0 = scmp.ne.s32.totalorder %s24_s28, %s498_s29  ;;  %p504_p2 = scmp.lt.s32.totalorder %s498_s29, %s498_s29 }
   0x6   :  { %p505_p3 = por %p504_p2, %p503_p1 }
   0x8   :  { %p506_p4 = pnand %p505_p3, %p499_p0 }
   0xa   :  { %509 = shalt.err (!%p506_p4)
}
   0xb   :  { %26 = dma.hbm_to_vmem [thread:$0]  %s665_s1, 128, %s24_s28, [#allocation3]  }
   0xc   :  { %530 = dma.done.wait [#allocation3], 128  }
   0xd   :  { %531 = vsyncadd [#allocation3], 4294967168  ;;  %v535_v0 = vmov 0.0   ;;  %vm536_vm0 = vmmov 0   ;;  %v46_v1 = vld [vmem:[%s666_s2 + $0x20] sm:$0xff]  ;;  %v43_v2 = vld [vmem:[%s666_s2 + $0x8] sm:$0xff] }
   0xe   :  { %440 = vmatprep.subr.mxu0 %v535_v0  ;;  %449 = vmatprep.subr.mxu1 %v535_v0  ;;  %v45_v3 = vld [vmem:[%s666_s2 + $0x18] sm:$0xff]  ;;  %v42_v4 = vld [vmem:[%s666_s2] sm:$0xff]  ;;  %vm123_vm1 = vcmask 130048   ;;  %v44_v6 = vld [vmem:[%s666_s2 + $0x10] sm:$0xff]  ;;  %vm49_vm2 = vcmask 195584   ;;  %vm229_vm4 = vcmask 261120  }
   0xf   :  { %453 = vmatprep.mubr.msk.f32.mxu1 %vm536_vm0, %v535_v0  ;;  %446 = vmatprep.mubr.msk.f32.mxu0 %vm536_vm0, %v535_v0  ;;  %v47_v5 = vld [vmem:[%s664_s0] sm:$0xff]  ;;  %v221_v8 = vld [vmem:[%s668_s4 + $0x18] sm:$0xff]  ;;  %v220_v9 = vld [vmem:[%s668_s4 + $0x10] sm:$0xff]  ;;  %s537_s14 = smov [#allocation5]  }
  0x10   :  { %441 = vmatpush3.msra.mxu0 %v46_v1  ;;  %450 = vmatpush3.msra.mxu1 %v43_v2  ;;  %v48_v7 = vld [vmem:[#allocation2] sm:$0xff]  ;;  %v219_v10 = vld [vmem:[%s668_s4 + $0x8] sm:$0xff]  ;;  %v319_v30 = vld [vmem:[%s670_s6 + $0x18] sm:$0xff]  ;;  %s407_s15 = sshll.u32 %s537_s14, 4  ;;  %s408_s15 = int_to_ptr.vmem [resolvable:$true] %s407_s15 }
  0x11   :  { %442 = vmatprep.subr.mxu0 %v535_v0  ;;  %451 = vmatprep.subr.mxu1 %v535_v0  ;;  %v218_v11 = vld [vmem:[%s668_s4] sm:$0xff]  ;;  %v318_v31 = vld [vmem:[%s670_s6 + $0x10] sm:$0xff]  ;;  %v317_v32 = vld [vmem:[%s670_s6 + $0x8] sm:$0xff]  ;;  %s510_s16 = scalar_lea.vmem %s408_s15, 128  ;;  %p515_p6 = scmp.lt.s32.totalorder %s408_s15, %s408_s15 }
  0x12   :  { %443 = vmatpush3.msra.mxu0 %v45_v3  ;;  %452 = vmatpush3.msra.mxu1 %v42_v4  ;;  %v418_v14 = vld [vmem:[%s667_s3] ss:$0 sm:$0xff]  ;;  %p511_p5 = scmp.ne.s32.totalorder %s408_s15, %s510_s16  ;;  %p516_p7 = scmp.lt.s32.totalorder %s510_s16, %s510_s16 }
  0x13   :  { %444 = vmatprep.subr.mxu0 %v535_v0  ;;  %454 = vmatmul.mubr.msk.f32.vlgmr.msra.gmra.mxu1 %vm123_vm1, %v47_v5  ;;  %v316_v33 = vld [vmem:[%s670_s6] sm:$0xff] }
  0x14   :  { %445 = vmatpush3.msra.mxu0 %v44_v6  ;;  %456 = vmatprep.subr.mxu1 %v535_v0  ;;  %v419_v34 = vld [vmem:[%s669_s5] ss:$0 sm:$0xff]  ;;  %p517_p8 = por %p516_p7, %p515_p6 }
  0x15   :  { %447 = vmatmul.mubr.msk.f32.vlgmr.msra.gmra.mxu0 %vm49_vm2, %v48_v7  ;;  %464 = vmatprep.mubr.msk.f32.mxu1 %vm536_vm0, %v535_v0  ;;  %v421_v49 = vld [vmem:[%s671_s7] ss:$0 sm:$0xff] }
  0x16   :  { %467 = vmatprep.subr.mxu0 %v535_v0  ;;  %475 = vmatprep.mubr.msk.f32.mxu0 %vm536_vm0, %v535_v0  ;;  %p518_p9 = pnand %p517_p8, %p511_p5 }
  0x17   :  { %457 = vmatpush3.msra.mxu1 %v221_v8  ;;  %468 = vmatpush3.msra.mxu0 %v319_v30 }
  0x18   :  { %458 = vmatprep.subr.mxu1 %v535_v0  ;;  %469 = vmatprep.subr.mxu0 %v535_v0 }
  0x19   :  { %459 = vmatpush3.msra.mxu1 %v220_v9  ;;  %470 = vmatpush3.msra.mxu0 %v318_v31 }
  0x1a   :  { %460 = vmatprep.subr.mxu1 %v535_v0  ;;  %471 = vmatprep.subr.mxu0 %v535_v0 }
  0x1b   :  { %461 = vmatpush3.msra.mxu1 %v219_v10  ;;  %472 = vmatpush3.msra.mxu0 %v317_v32 }
  0x1c   :  { %462 = vmatprep.subr.mxu1 %v535_v0  ;;  %473 = vmatprep.subr.mxu0 %v535_v0 }
  0x1d   :  { %463 = vmatpush3.msra.mxu1 %v218_v11  ;;  %474 = vmatpush3.msra.mxu0 %v316_v33 }
  0xd3   :  { %v193_v12 = vpop.f32.mrf.mxu1 }
  0xd5   :  { %v119_v13 = vpop.f32.mrf.mxu0  ;;  %v455_v15 = vpop.f32.mrf.mxu1 }
  0xd6   :  { %v194_v16 = vadd.f32 %v193_v12, %v119_v13 }
  0xd7   :  { %v448_v17 = vpop.f32.mrf.mxu0 }
  0xd8   :  { %v204_v18 = vadd.f32 %v418_v14, %v194_v16 }
  0xda   :  { %v206_v19 = vmul.f32 1.442695, %v204_v18  ;;  %vm205_vm5 = vcmp.gt.f32.partialorder %v204_v18, 20.0 }
  0xdc   :  { %482 = vpow2.f32 %v206_v19 }
  0xe9   :  { %v483_v20 = vpop.eup %482 }
  0xea   :  { %v208_v21 = vadd.f32 1.0, %v483_v20  ;;  %v211_v22 = vmul.f32 -0.5, %v483_v20  ;;  %v214_v24 = vand.u32 2147483647, %v483_v20 }
  0xec   :  { %484 = vlog2.f32 %v208_v21  ;;  %v212_v23 = vadd.f32 1.0, %v211_v22  ;;  %vm215_vm3 = vcmp.lt.f32.partialorder %v214_v24, 0.0004427343 }
  0xee   :  { %v213_v27 = vmul.f32 %v483_v20, %v212_v23 }
  0xf9   :  { %v485_v25 = vpop.eup %484 }
  0xfa   :  { %v210_v26 = vmul.f32 0.6931472, %v485_v25 }
  0xfc   :  { %v216_v28 = vsel %vm215_vm3, %v213_v27, %v210_v26 }
  0xfd   :  { %v217_v29 = vsel %vm205_vm5, %v204_v18, %v216_v28 }
  0xfe   :  { %465 = vmatmul.mubr.msk.f32.vlgmr.msra.gmra.mxu1 %vm229_vm4, %v217_v29 }
 0x1be   :  { %v299_v35 = vpop.f32.mrf.mxu1 }
 0x1bf   :  { %v300_v36 = vadd.f32 %v419_v34, %v299_v35 }
 0x1c0   :  { %v466_v37 = vpop.f32.mrf.mxu1 }
 0x1c1   :  { %v304_v38 = vmul.f32 1.442695, %v300_v36  ;;  %vm303_vm7 = vcmp.gt.f32.partialorder %v300_v36, 20.0 }
 0x1c3   :  { %486 = vpow2.f32 %v304_v38 }
 0x1d0   :  { %v487_v39 = vpop.eup %486 }
 0x1d1   :  { %v306_v40 = vadd.f32 1.0, %v487_v39  ;;  %v309_v41 = vmul.f32 -0.5, %v487_v39  ;;  %v312_v43 = vand.u32 2147483647, %v487_v39 }
 0x1d3   :  { %488 = vlog2.f32 %v306_v40  ;;  %v310_v42 = vadd.f32 1.0, %v309_v41  ;;  %vm313_vm6 = vcmp.lt.f32.partialorder %v312_v43, 0.0004427343 }
 0x1d5   :  { %v311_v46 = vmul.f32 %v487_v39, %v310_v42 }
 0x1e0   :  { %v489_v44 = vpop.eup %488 }
 0x1e1   :  { %v308_v45 = vmul.f32 0.6931472, %v489_v44 }
 0x1e3   :  { %v314_v47 = vsel %vm313_vm6, %v311_v46, %v308_v45 }
 0x1e4   :  { %v315_v48 = vsel %vm303_vm7, %v300_v36, %v314_v47 }
 0x1e5   :  { %476 = vmatmul.mubr.msk.f32.vlgmr.msra.gmra.mxu0 %vm229_vm4, %v315_v48 }
 0x2a5   :  { %v396_v50 = vpop.f32.mrf.mxu0 }
 0x2a6   :  { %v397_v51 = vadd.f32 %v421_v49, %v396_v50 }
 0x2a7   :  { %v477_v52 = vpop.f32.mrf.mxu0 }
 0x2a8   :  { %400 = vst.msk [vmem:[#allocation5] sm:$0xff] %vm229_vm4, %v397_v51 }
 0x2a9   :  { %521 = shalt.err (!%p518_p9)
}
 0x2aa   :  { %410 = dma.vmem_to_hbm [thread:$0]  %s408_s15, 128, %s672_s8, [#allocation4]  }
 0x2ab   :  { %532 = dma.done.wait [#allocation4], 128  }
 0x2ac   :  { %533 = vsyncadd [#allocation4], 4294967168 }
 0x2ad   :  { %414 = vsyncpa [#allocation3], 1 }
 0x2ae   :  { %415 = vsyncpa [#allocation4], 1 }

</bundles_post_ra>
